<compile_context>
chip_gen: v6e
topology: v6e:2x2x1
jax: 0.10.0
libtpu: 0.0.40
codegen_flags: <defaults>
</compile_context>

<pallas_src>
import jax
import jax.numpy as jnp
from jax import lax
from jax.experimental import pallas as pl
from jax.experimental.pallas import tpu as pltpu

_EPS = 1e-12          # F.normalize eps (norm clamped at eps)
_EPS2 = _EPS * _EPS   # clamp applied to the squared norm before rsqrt
_LANES = 128

_PARALLEL = getattr(pltpu, "PARALLEL", "parallel")
_CORE_PARALLEL = getattr(pltpu, "CORE_PARALLEL", _PARALLEL)


def _cdiv(a, b):
    return -(-a // b)


def _round_up(v, m):
    return ((v + m - 1) // m) * m


def _tensorcores_per_device():
    """2 on TPU v7x (two TensorCores per chip), else 1 (v5e / v6e)."""
    try:
        kind = jax.devices()[0].device_kind.lower()
    except Exception:
        return 1
    if "v7" in kind or "7x" in kind:
        return 2
    return 1


# ----------------------------------------------------------------------------- kernel


def _rot6d_kernel(x_ref, o_ref):
    # x_ref: (6, TM, 128) f32 SoA component planes [ax, bx, ay, by, az, bz]
    # o_ref: (9, TM, 128) planes; plane j*3+k = component j of basis vector k
    ax = x_ref[0]
    bx = x_ref[1]
    ay = x_ref[2]
    by = x_ref[3]
    az = x_ref[4]
    bz = x_ref[5]

    # b1 = normalize(a): one rsqrt (EUP) + 3 muls; clamp the *squared* norm at eps^2 to keep
    # F.normalize's max(norm, eps) semantics.
    na2 = ax * ax + ay * ay + az * az
    rinv_a = lax.rsqrt(jnp.maximum(na2, _EPS2))
    b1x = ax * rinv_a
    b1y = ay * rinv_a
    b1z = az * rinv_a

    # dot = <b1, b>
    dot = b1x * bx + b1y * by + b1z * bz

    # b2 = normalize(b - dot * b1)
    ux = bx - dot * b1x
    uy = by - dot * b1y
    uz = bz - dot * b1z
    nu2 = ux * ux + uy * uy + uz * uz
    rinv_u = lax.rsqrt(jnp.maximum(nu2, _EPS2))
    b2x = ux * rinv_u
    b2y = uy * rinv_u
    b2z = uz * rinv_u

    # b3 = b1 x b2
    b3x = b1y * b2z - b1z * b2y
    b3y = b1z * b2x - b1x * b2z
    b3z = b1x * b2y - b1y * b2x

    planes = (b1x, b2x, b3x, b1y, b2y, b3y, b1z, b2z, b3z)
    odt = o_ref.dtype
    for p, v in enumerate(planes):          # static Python loop over 9 plane stores
        o_ref[p] = v.astype(odt)            # lane-dense (TM, 128) unmasked stores


# ----------------------------------------------------------------------------- pallas wrapper


def rot6d_to_matrix_soa(x_soa, tm, *, out_dtype=jnp.float32, num_cores=None):
    """Fusion-friendly entry point.

    x_soa: (6, M, 128) f32 SoA input (plane c = component c of the 6D repr), M % tm == 0,
           tm % 8 == 0.  Returns (9, M, 128) `out_dtype` SoA rotation-matrix planes
           (plane j*3+k = row j, column k).
    """
    if num_cores is None:
        num_cores = _tensorcores_per_device()
    six, m_pad, lanes = x_soa.shape
    assert six == 6 and lanes == _LANES, x_soa.shape
    assert tm % 8 == 0 and m_pad % tm == 0, (tm, m_pad)
    blocks = m_pad // tm

    # v7x: CORE_PARALLEL actually splits the grid across the 2 TensorCores; plain "parallel"
    # does not.  Single-TC chips keep PARALLEL (measured identical to "arbitrary").
    sem = _CORE_PARALLEL if (num_cores > 1 and blocks > 1) else _PARALLEL

    out_itemsize = jnp.dtype(out_dtype).itemsize
    in_block = 6 * tm * lanes * 4
    out_block = 9 * tm * lanes * out_itemsize
    footprint = 2 * (in_block + out_block)          # double-buffered in + out
    cp_kwargs = dict(dimension_semantics=(sem,))
    if footprint > 14 * 1024 * 1024:
        # Only needed if a caller pushes tm well past 512 (v5e's 16 MiB scoped default).
        cp_kwargs["vmem_limit_bytes"] = min(int(footprint * 1.5) + (2 << 20), 60 << 20)

    n_elems = m_pad * lanes
    call_kwargs = {}
    if hasattr(pl, "CostEstimate"):
        call_kwargs["cost_estimate"] = pl.CostEstimate(
            flops=40 * n_elems,
            transcendentals=2 * n_elems,
            bytes_accessed=(6 * 4 + 9 * out_itemsize) * n_elems,
        )

    return pl.pallas_call(
        _rot6d_kernel,
        out_shape=jax.ShapeDtypeStruct((9, m_pad, lanes), out_dtype),
        grid_spec=pltpu.PrefetchScalarGridSpec(
            num_scalar_prefetch=0,
            grid=(blocks,),
            in_specs=[pl.BlockSpec((6, tm, lanes), lambda i: (0, i, 0))],
            out_specs=pl.BlockSpec((9, tm, lanes), lambda i: (0, i, 0)),
        ),
        compiler_params=pltpu.CompilerParams(**cp_kwargs),
        **call_kwargs,
    )(x_soa)


def soa_to_matrices(out_soa, n):
    """(9, M, 128) SoA planes (plane j*3+k) -> PyTorch-compatible (N, 3, 3)."""
    nine, m_pad, lanes = out_soa.shape
    out_t = out_soa.reshape(nine, m_pad * lanes)[:, :n]       # (9, N)
    return out_t.reshape(3, 3, n).transpose(2, 0, 1)          # (N, 3, 3)


def _choose_tiling(m, tm_target, num_cores):
    """Adaptive sublane tile: minimize padding (<= ~8*blocks rows) at the target block size;
    force >=2 (multiple-of-cores) blocks only on 2-TensorCore chips."""
    tm_target = max(8, _round_up(int(tm_target), 8))
    blocks = max(1, _cdiv(m, tm_target))
    if num_cores > 1:
        blocks = _round_up(max(blocks, num_cores), num_cores)
    tm = _round_up(_cdiv(m, blocks), 8)
    return tm, blocks


# ----------------------------------------------------------------------------- jnp path / reference


def _rot6d_jnp(x_n6):
    """Pure-jnp path mirroring the PyTorch ContinousRotReprDecoder math exactly.
    Used both as the small-N fast path (XLA fuses it into neighbouring ops) and as the
    correctness reference."""
    x = x_n6.reshape(-1, 3, 2)
    a = x[:, :, 0]
    b = x[:, :, 1]
    na = jnp.maximum(jnp.linalg.norm(a, axis=1, keepdims=True), _EPS)
    b1 = a / na
    dot = jnp.sum(b1 * b, axis=1, keepdims=True)
    u = b - dot * b1
    nu = jnp.maximum(jnp.linalg.norm(u, axis=1, keepdims=True), _EPS)
    b2 = u / nu
    b3 = jnp.cross(b1, b2, axis=1)
    return jnp.stack([b1, b2, b3], axis=-1)


# ----------------------------------------------------------------------------- public API


def continuous_rot_repr_decoder(module_input, *, tm_target=512, out_dtype=jnp.float32,
                                min_pallas_rotations=1 << 17, force_pallas=False):
    """JAX/Pallas equivalent of ContinousRotReprDecoder.forward.

    module_input: any-shaped f32 array with prod(shape) % 6 == 0.
    Returns (N, 3, 3) `out_dtype`, N = prod(shape) // 6.
    """
    x = jnp.asarray(module_input, jnp.float32).reshape(-1, 6)   # row-major, like .view(-1, 3, 2)
    n = x.shape[0]

    # Small-N regime (the actual MotionDecoder workload): the pallas launch + AoS<->SoA
    # transposes are pure fixed latency; let XLA fuse the tiny elementwise math instead.
    if n == 0 or (not force_pallas and n < min_pallas_rotations):
        return _rot6d_jnp(x).astype(out_dtype)

    num_cores = _tensorcores_per_device()
    m = _cdiv(n, _LANES)                         # sublane rows needed for n rotations
    tm, blocks = _choose_tiling(m, tm_target, num_cores)
    m_pad = tm * blocks
    n_pad = m_pad * _LANES

    # AoS -> SoA wrapper glue (see TODO at top: fuse this layout into the producing Linear
    # and keep SoA for matrot2aa to remove these extra HBM passes).
    # Pad with 1.0 so padded lanes stay finite (b2 = b3 = 0), then sliced off.
    x_pad = x if n_pad == n else jnp.pad(x, ((0, n_pad - n), (0, 0)), constant_values=1.0)
    x_soa = x_pad.T.reshape(6, m_pad, _LANES)                    # (6, M, 128)

    out_soa = rot6d_to_matrix_soa(x_soa, tm, out_dtype=out_dtype, num_cores=num_cores)
    return soa_to_matrices(out_soa, n)


# ----------------------------------------------------------------------------- test


if __name__ == "__main__":
    # MotionDecoder feeds the rot decoder with (batch * frame_num, 6); batch=2, frame_num=8.
    key = jax.random.PRNGKey(0)
    k0, k1 = jax.random.split(key)
    module_input = jax.random.normal(k0, (2, 8, 6), dtype=jnp.float32)
    ref = _rot6d_jnp(jnp.asarray(module_input, jnp.float32).reshape(-1, 6))

    # 1) Pallas path (forced, since the real MotionDecoder shape is tiny).
    out = jax.block_until_ready(continuous_rot_repr_decoder(module_input, force_pallas=True))
    assert out.shape == (16, 3, 3), out.shape
    assert jnp.allclose(out, ref, atol=3e-5, rtol=3e-5), (
        "pallas mismatch", float(jnp.max(jnp.abs(out - ref))))

    # 2) Pallas path with a multi-block grid (covers index maps / adaptive tiling / core split).
    x_big = jax.random.normal(k1, (2048, 6), dtype=jnp.float32)
    out2 = jax.block_until_ready(
        continuous_rot_repr_decoder(x_big, force_pallas=True, tm_target=8))
    ref2 = _rot6d_jnp(x_big)
    assert out2.shape == (2048, 3, 3), out2.shape
    assert jnp.allclose(out2, ref2, atol=3e-5, rtol=3e-5), (
        "pallas multi-block mismatch", float(jnp.max(jnp.abs(out2 - ref2))))

    # 3) Default dispatch: small N takes the fused pure-jnp path (MotionDecoder's real regime).
    out3 = jax.block_until_ready(continuous_rot_repr_decoder(module_input))
    assert jnp.allclose(out3, ref, atol=3e-5, rtol=3e-5), "jnp fallback mismatch"

    print("KERNEL_OK")
</pallas_src>

<mosaic_0001>
module attributes {stable_mosaic.version = 11 : i64} {
  func.func @_rot6d_kernel(%arg0: i32, %arg1: memref<6x8x128xf32, #tpu.memory_space<vmem>>, %arg2: memref<9x8x128xf32, #tpu.memory_space<vmem>>) attributes {dimension_semantics = [#tpu.dimension_semantics<parallel>], iteration_bounds = array<i64: 1>, scalar_prefetch = 0 : i64, scratch_operands = 0 : i64, tpu.core_type = #tpu.core_type<tc>, window_params = [{transform_indices = @transform_0, window_bounds = array<i64: 6, 8, 128>}, {transform_indices = @transform_1, window_bounds = array<i64: 9, 8, 128>}]} {
    %c0 = arith.constant 0 : index
    %c0_0 = arith.constant 0 : index
    %c0_1 = arith.constant 0 : index
    %0 = vector.load %arg1[%c0, %c0_0, %c0_1] : memref<6x8x128xf32, #tpu.memory_space<vmem>>, vector<1x8x128xf32>
    %1 = vector.shape_cast %0 : vector<1x8x128xf32> to vector<8x128xf32>
    %c1 = arith.constant 1 : index
    %c0_2 = arith.constant 0 : index
    %c0_3 = arith.constant 0 : index
    %2 = vector.load %arg1[%c1, %c0_2, %c0_3] : memref<6x8x128xf32, #tpu.memory_space<vmem>>, vector<1x8x128xf32>
    %3 = vector.shape_cast %2 : vector<1x8x128xf32> to vector<8x128xf32>
    %c2 = arith.constant 2 : index
    %c0_4 = arith.constant 0 : index
    %c0_5 = arith.constant 0 : index
    %4 = vector.load %arg1[%c2, %c0_4, %c0_5] : memref<6x8x128xf32, #tpu.memory_space<vmem>>, vector<1x8x128xf32>
    %5 = vector.shape_cast %4 : vector<1x8x128xf32> to vector<8x128xf32>
    %c3 = arith.constant 3 : index
    %c0_6 = arith.constant 0 : index
    %c0_7 = arith.constant 0 : index
    %6 = vector.load %arg1[%c3, %c0_6, %c0_7] : memref<6x8x128xf32, #tpu.memory_space<vmem>>, vector<1x8x128xf32>
    %7 = vector.shape_cast %6 : vector<1x8x128xf32> to vector<8x128xf32>
    %c4 = arith.constant 4 : index
    %c0_8 = arith.constant 0 : index
    %c0_9 = arith.constant 0 : index
    %8 = vector.load %arg1[%c4, %c0_8, %c0_9] : memref<6x8x128xf32, #tpu.memory_space<vmem>>, vector<1x8x128xf32>
    %9 = vector.shape_cast %8 : vector<1x8x128xf32> to vector<8x128xf32>
    %c5 = arith.constant 5 : index
    %c0_10 = arith.constant 0 : index
    %c0_11 = arith.constant 0 : index
    %10 = vector.load %arg1[%c5, %c0_10, %c0_11] : memref<6x8x128xf32, #tpu.memory_space<vmem>>, vector<1x8x128xf32>
    %11 = vector.shape_cast %10 : vector<1x8x128xf32> to vector<8x128xf32>
    %12 = arith.mulf %1, %1 : vector<8x128xf32>
    %13 = arith.mulf %5, %5 : vector<8x128xf32>
    %14 = arith.addf %12, %13 : vector<8x128xf32>
    %15 = arith.mulf %9, %9 : vector<8x128xf32>
    %16 = arith.addf %14, %15 : vector<8x128xf32>
    %cst = arith.constant 1.000000e-24 : f32
    %17 = vector.broadcast %cst : f32 to vector<8x128xf32>
    %18 = arith.maximumf %16, %17 : vector<8x128xf32>
    %19 = math.rsqrt %18 : vector<8x128xf32>
    %20 = arith.mulf %1, %19 : vector<8x128xf32>
    %21 = arith.mulf %5, %19 : vector<8x128xf32>
    %22 = arith.mulf %9, %19 : vector<8x128xf32>
    %23 = arith.mulf %20, %3 : vector<8x128xf32>
    %24 = arith.mulf %21, %7 : vector<8x128xf32>
    %25 = arith.addf %23, %24 : vector<8x128xf32>
    %26 = arith.mulf %22, %11 : vector<8x128xf32>
    %27 = arith.addf %25, %26 : vector<8x128xf32>
    %28 = arith.mulf %27, %20 : vector<8x128xf32>
    %29 = arith.subf %3, %28 : vector<8x128xf32>
    %30 = arith.mulf %27, %21 : vector<8x128xf32>
    %31 = arith.subf %7, %30 : vector<8x128xf32>
    %32 = arith.mulf %27, %22 : vector<8x128xf32>
    %33 = arith.subf %11, %32 : vector<8x128xf32>
    %34 = arith.mulf %29, %29 : vector<8x128xf32>
    %35 = arith.mulf %31, %31 : vector<8x128xf32>
    %36 = arith.addf %34, %35 : vector<8x128xf32>
    %37 = arith.mulf %33, %33 : vector<8x128xf32>
    %38 = arith.addf %36, %37 : vector<8x128xf32>
    %cst_12 = arith.constant 1.000000e-24 : f32
    %39 = vector.broadcast %cst_12 : f32 to vector<8x128xf32>
    %40 = arith.maximumf %38, %39 : vector<8x128xf32>
    %41 = math.rsqrt %40 : vector<8x128xf32>
    %42 = arith.mulf %29, %41 : vector<8x128xf32>
    %43 = arith.mulf %31, %41 : vector<8x128xf32>
    %44 = arith.mulf %33, %41 : vector<8x128xf32>
    %45 = arith.mulf %21, %44 : vector<8x128xf32>
    %46 = arith.mulf %22, %43 : vector<8x128xf32>
    %47 = arith.subf %45, %46 : vector<8x128xf32>
    %48 = arith.mulf %22, %42 : vector<8x128xf32>
    %49 = arith.mulf %20, %44 : vector<8x128xf32>
    %50 = arith.subf %48, %49 : vector<8x128xf32>
    %51 = arith.mulf %20, %43 : vector<8x128xf32>
    %52 = arith.mulf %21, %42 : vector<8x128xf32>
    %53 = arith.subf %51, %52 : vector<8x128xf32>
    %c0_13 = arith.constant 0 : index
    %c0_14 = arith.constant 0 : index
    %c0_15 = arith.constant 0 : index
    %54 = vector.load %arg2[%c0_13, %c0_14, %c0_15] : memref<9x8x128xf32, #tpu.memory_space<vmem>>, vector<1x8x128xf32>
    %55 = vector.shape_cast %54 : vector<1x8x128xf32> to vector<8x128xf32>
    %56 = vector.shape_cast %20 : vector<8x128xf32> to vector<1x8x128xf32>
    tpu.vector_store %arg2[%c0_13, %c0_14, %c0_15], %56 {strides = array<i32>} : memref<9x8x128xf32, #tpu.memory_space<vmem>>, vector<1x8x128xf32>,
    %c1_16 = arith.constant 1 : index
    %c0_17 = arith.constant 0 : index
    %c0_18 = arith.constant 0 : index
    %57 = vector.load %arg2[%c1_16, %c0_17, %c0_18] : memref<9x8x128xf32, #tpu.memory_space<vmem>>, vector<1x8x128xf32>
    %58 = vector.shape_cast %57 : vector<1x8x128xf32> to vector<8x128xf32>
    %59 = vector.shape_cast %42 : vector<8x128xf32> to vector<1x8x128xf32>
    tpu.vector_store %arg2[%c1_16, %c0_17, %c0_18], %59 {strides = array<i32>} : memref<9x8x128xf32, #tpu.memory_space<vmem>>, vector<1x8x128xf32>,
    %c2_19 = arith.constant 2 : index
    %c0_20 = arith.constant 0 : index
    %c0_21 = arith.constant 0 : index
    %60 = vector.load %arg2[%c2_19, %c0_20, %c0_21] : memref<9x8x128xf32, #tpu.memory_space<vmem>>, vector<1x8x128xf32>
    %61 = vector.shape_cast %60 : vector<1x8x128xf32> to vector<8x128xf32>
    %62 = vector.shape_cast %47 : vector<8x128xf32> to vector<1x8x128xf32>
    tpu.vector_store %arg2[%c2_19, %c0_20, %c0_21], %62 {strides = array<i32>} : memref<9x8x128xf32, #tpu.memory_space<vmem>>, vector<1x8x128xf32>,
    %c3_22 = arith.constant 3 : index
    %c0_23 = arith.constant 0 : index
    %c0_24 = arith.constant 0 : index
    %63 = vector.load %arg2[%c3_22, %c0_23, %c0_24] : memref<9x8x128xf32, #tpu.memory_space<vmem>>, vector<1x8x128xf32>
    %64 = vector.shape_cast %63 : vector<1x8x128xf32> to vector<8x128xf32>
    %65 = vector.shape_cast %21 : vector<8x128xf32> to vector<1x8x128xf32>
    tpu.vector_store %arg2[%c3_22, %c0_23, %c0_24], %65 {strides = array<i32>} : memref<9x8x128xf32, #tpu.memory_space<vmem>>, vector<1x8x128xf32>,
    %c4_25 = arith.constant 4 : index
    %c0_26 = arith.constant 0 : index
    %c0_27 = arith.constant 0 : index
    %66 = vector.load %arg2[%c4_25, %c0_26, %c0_27] : memref<9x8x128xf32, #tpu.memory_space<vmem>>, vector<1x8x128xf32>
    %67 = vector.shape_cast %66 : vector<1x8x128xf32> to vector<8x128xf32>
    %68 = vector.shape_cast %43 : vector<8x128xf32> to vector<1x8x128xf32>
    tpu.vector_store %arg2[%c4_25, %c0_26, %c0_27], %68 {strides = array<i32>} : memref<9x8x128xf32, #tpu.memory_space<vmem>>, vector<1x8x128xf32>,
    %c5_28 = arith.constant 5 : index
    %c0_29 = arith.constant 0 : index
    %c0_30 = arith.constant 0 : index
    %69 = vector.load %arg2[%c5_28, %c0_29, %c0_30] : memref<9x8x128xf32, #tpu.memory_space<vmem>>, vector<1x8x128xf32>
    %70 = vector.shape_cast %69 : vector<1x8x128xf32> to vector<8x128xf32>
    %71 = vector.shape_cast %50 : vector<8x128xf32> to vector<1x8x128xf32>
    tpu.vector_store %arg2[%c5_28, %c0_29, %c0_30], %71 {strides = array<i32>} : memref<9x8x128xf32, #tpu.memory_space<vmem>>, vector<1x8x128xf32>,
    %c6 = arith.constant 6 : index
    %c0_31 = arith.constant 0 : index
    %c0_32 = arith.constant 0 : index
    %72 = vector.load %arg2[%c6, %c0_31, %c0_32] : memref<9x8x128xf32, #tpu.memory_space<vmem>>, vector<1x8x128xf32>
    %73 = vector.shape_cast %72 : vector<1x8x128xf32> to vector<8x128xf32>
    %74 = vector.shape_cast %22 : vector<8x128xf32> to vector<1x8x128xf32>
    tpu.vector_store %arg2[%c6, %c0_31, %c0_32], %74 {strides = array<i32>} : memref<9x8x128xf32, #tpu.memory_space<vmem>>, vector<1x8x128xf32>,
    %c7 = arith.constant 7 : index
    %c0_33 = arith.constant 0 : index
    %c0_34 = arith.constant 0 : index
    %75 = vector.load %arg2[%c7, %c0_33, %c0_34] : memref<9x8x128xf32, #tpu.memory_space<vmem>>, vector<1x8x128xf32>
    %76 = vector.shape_cast %75 : vector<1x8x128xf32> to vector<8x128xf32>
    %77 = vector.shape_cast %44 : vector<8x128xf32> to vector<1x8x128xf32>
    tpu.vector_store %arg2[%c7, %c0_33, %c0_34], %77 {strides = array<i32>} : memref<9x8x128xf32, #tpu.memory_space<vmem>>, vector<1x8x128xf32>,
    %c8 = arith.constant 8 : index
    %c0_35 = arith.constant 0 : index
    %c0_36 = arith.constant 0 : index
    %78 = vector.load %arg2[%c8, %c0_35, %c0_36] : memref<9x8x128xf32, #tpu.memory_space<vmem>>, vector<1x8x128xf32>
    %79 = vector.shape_cast %78 : vector<1x8x128xf32> to vector<8x128xf32>
    %80 = vector.shape_cast %53 : vector<8x128xf32> to vector<1x8x128xf32>
    tpu.vector_store %arg2[%c8, %c0_35, %c0_36], %80 {strides = array<i32>} : memref<9x8x128xf32, #tpu.memory_space<vmem>>, vector<1x8x128xf32>,
    return
  }
  func.func @transform_0(%arg0: i32) -> (i32, i32, i32) {
    %c0_i32 = arith.constant 0 : i32
    %c0_i32_0 = arith.constant 0 : i32
    %c0_i32_1 = arith.constant 0 : i32
    return %c0_i32, %arg0, %c0_i32_0 : i32, i32, i32
  }
  func.func @transform_1(%arg0: i32) -> (i32, i32, i32) {
    %c0_i32 = arith.constant 0 : i32
    %c0_i32_0 = arith.constant 0 : i32
    %c0_i32_1 = arith.constant 0 : i32
    return %c0_i32, %arg0, %c0_i32_0 : i32, i32, i32
  }
}

</mosaic_0001>

<bundles_post_ra>
// kernel: tpu_custom_call.1
= control target key start
LH: loop header
LB: loop body
LE: loop exit
PB: predicated region body
PF: predicated region fallthrough
CT: control target
= control target key end

     0   :  { %6 = vsyncpa [#allocation3], 0  ;;  %s186_s0 = inlined_call_operand.hbm [shape: f32[6,8,128], index: 0, kind: input, shape index: {}]   ;;  %s187_s1 = inlined_call_operand.hbm [shape: f32[9,8,128], index: 1, kind: output, shape index: {}]  }
   0x1   :  { %7 = vsyncpa [#allocation4], 0  ;;  %s160_s6 = smov [#allocation2]  }
   0x2   :  { %s13_s7 = sshll.u32 %s160_s6, 4  ;;  %s14_s7 = int_to_ptr.vmem [resolvable:$true] %s13_s7 }
   0x3   :  { %s124_s8 = scalar_lea.vmem %s14_s7, 768  ;;  %p129_p1 = scmp.lt.s32.totalorder %s14_s7, %s14_s7 }
   0x4   :  { %p125_p0 = scmp.ne.s32.totalorder %s14_s7, %s124_s8  ;;  %p130_p2 = scmp.lt.s32.totalorder %s124_s8, %s124_s8 }
   0x6   :  { %p131_p3 = por %p130_p2, %p129_p1 }
   0x8   :  { %p132_p4 = pnand %p131_p3, %p125_p0 }
   0xa   :  { %135 = shalt.err (!%p132_p4)
}
   0xb   :  { %s161_s9 = smov 128   ;;  %s162_s10 = smov 8  }
   0xc   :  { %19 = dma.hbm_to_vmem [thread:$0]  %s186_s0, 768, %s14_s7, [#allocation3], %s161_s9, %s161_s9, %s162_s10  }
   0xd   :  { %156 = dma.done.wait [#allocation3], 768  }
   0xe   :  { %157 = vsyncadd [#allocation3], 4294966528  ;;  %v23_v0 = vld [vmem:[#allocation2] sm:$0xff]  ;;  %v27_v1 = vld [vmem:[#allocation2 + $0x10] sm:$0xff]  ;;  %s163_s0 = smov [#allocation5]  }
   0xf   :  { %v31_v2 = vld [vmem:[#allocation2 + $0x20] sm:$0xff]  ;;  %v34_v3 = vmul.f32 %v23_v0, %v23_v0  ;;  %v35_v4 = vmul.f32 %v27_v1, %v27_v1  ;;  %v25_v10 = vld [vmem:[#allocation2 + $0x8] sm:$0xff]  ;;  %v29_v11 = vld [vmem:[#allocation2 + $0x18] sm:$0xff]  ;;  %s96_s13 = sshll.u32 %s163_s0, 4  ;;  %s97_s13 = int_to_ptr.vmem [resolvable:$true] %s96_s13 }
  0x10   :  { %v37_v5 = vmul.f32 %v31_v2, %v31_v2  ;;  %v33_v12 = vld [vmem:[#allocation2 + $0x28] sm:$0xff]  ;;  %s136_s14 = scalar_lea.vmem %s97_s13, 1152  ;;  %p141_p6 = scmp.lt.s32.totalorder %s97_s13, %s97_s13 }
  0x11   :  { %v36_v6 = vadd.f32 %v35_v4, %v34_v3  ;;  %p137_p5 = scmp.ne.s32.totalorder %s97_s13, %s136_s14  ;;  %p142_p7 = scmp.lt.s32.totalorder %s136_s14, %s136_s14 }
  0x13   :  { %v38_v7 = vadd.f32 %v37_v5, %v36_v6  ;;  %p143_p8 = por %p142_p7, %p141_p6 }
  0x15   :  { %v39_v8 = vmax.f32 %v38_v7, 1e-24  ;;  %p144_p9 = pnand %p143_p8, %p137_p5 }
  0x17   :  { %112 = vrsqrt.f32 %v39_v8 }
  0x24   :  { %v113_v9 = vpop.eup %112 }
  0x25   :  { %v41_v13 = vmul.f32 %v113_v9, %v23_v0  ;;  %v42_v14 = vmul.f32 %v113_v9, %v27_v1  ;;  %v43_v15 = vmul.f32 %v113_v9, %v31_v2 }
  0x27   :  { %74 = vst [vmem:[#allocation5] sm:$0xff] %v41_v13  ;;  %80 = vst [vmem:[#allocation5 + $0x18] sm:$0xff] %v42_v14  ;;  %v44_v16 = vmul.f32 %v41_v13, %v25_v10  ;;  %v45_v17 = vmul.f32 %v42_v14, %v29_v11  ;;  %v47_v18 = vmul.f32 %v43_v15, %v33_v12 }
  0x28   :  { %86 = vst [vmem:[#allocation5 + $0x30] sm:$0xff] %v43_v15 }
  0x29   :  { %v46_v19 = vadd.f32 %v45_v17, %v44_v16 }
  0x2b   :  { %v48_v20 = vadd.f32 %v47_v18, %v46_v19 }
  0x2d   :  { %v49_v21 = vmul.f32 %v48_v20, %v41_v13  ;;  %v51_v22 = vmul.f32 %v48_v20, %v42_v14  ;;  %v53_v23 = vmul.f32 %v48_v20, %v43_v15 }
  0x2f   :  { %v50_v24 = vsub.f32 %v25_v10, %v49_v21  ;;  %v52_v25 = vsub.f32 %v29_v11, %v51_v22  ;;  %v54_v26 = vsub.f32 %v33_v12, %v53_v23 }
  0x31   :  { %v55_v27 = vmul.f32 %v50_v24, %v50_v24  ;;  %v56_v28 = vmul.f32 %v52_v25, %v52_v25  ;;  %v58_v29 = vmul.f32 %v54_v26, %v54_v26 }
  0x33   :  { %v57_v30 = vadd.f32 %v56_v28, %v55_v27 }
  0x35   :  { %v59_v31 = vadd.f32 %v58_v29, %v57_v30 }
  0x37   :  { %v60_v32 = vmax.f32 %v59_v31, 1e-24 }
  0x39   :  { %114 = vrsqrt.f32 %v60_v32 }
  0x46   :  { %v115_v33 = vpop.eup %114 }
  0x47   :  { %v62_v34 = vmul.f32 %v115_v33, %v50_v24  ;;  %v63_v35 = vmul.f32 %v115_v33, %v52_v25  ;;  %v64_v36 = vmul.f32 %v115_v33, %v54_v26 }
  0x49   :  { %76 = vst [vmem:[#allocation5 + $0x8] sm:$0xff] %v62_v34  ;;  %v65_v37 = vmul.f32 %v64_v36, %v42_v14  ;;  %v66_v38 = vmul.f32 %v63_v35, %v43_v15  ;;  %82 = vst [vmem:[#allocation5 + $0x20] sm:$0xff] %v63_v35  ;;  %v68_v39 = vmul.f32 %v62_v34, %v43_v15 }
  0x4a   :  { %88 = vst [vmem:[#allocation5 + $0x38] sm:$0xff] %v64_v36  ;;  %v69_v40 = vmul.f32 %v64_v36, %v41_v13  ;;  %v71_v41 = vmul.f32 %v63_v35, %v41_v13  ;;  %v72_v42 = vmul.f32 %v62_v34, %v42_v14 }
  0x4b   :  { %v67_v43 = vsub.f32 %v65_v37, %v66_v38 }
  0x4c   :  { %v70_v44 = vsub.f32 %v68_v39, %v69_v40  ;;  %v73_v45 = vsub.f32 %v71_v41, %v72_v42 }
  0x4d   :  { %78 = vst [vmem:[#allocation5 + $0x10] sm:$0xff] %v67_v43 }
  0x4e   :  { %84 = vst [vmem:[#allocation5 + $0x28] sm:$0xff] %v70_v44  ;;  %90 = vst [vmem:[#allocation5 + $0x40] sm:$0xff] %v73_v45 }
  0x4f   :  { %147 = shalt.err (!%p144_p9)
}
  0x50   :  { %102 = dma.vmem_to_hbm [thread:$0]  %s97_s13, 1152, %s187_s1, [#allocation4], %s161_s9, %s161_s9, %s162_s10  }
  0x51   :  { %158 = dma.done.wait [#allocation4], 1152  }
  0x52   :  { %159 = vsyncadd [#allocation4], 4294966144 }
  0x53   :  { %106 = vsyncpa [#allocation3], 1 }
  0x54   :  { %107 = vsyncpa [#allocation4], 1 }

</bundles_post_ra>
